<compile_context>
chip_gen: v7x
topology: tpu7x:2x2x1
jax: 0.10.0
libtpu: 0.0.40
codegen_flags: <defaults>
</compile_context>

<pallas_src>
import functools

import jax
import jax.numpy as jnp
from jax.experimental import pallas as pl
from jax.experimental.pallas import tpu as pltpu


# ----------------------------- kernel ---------------------------------------


def _bce2d_kernel(x_ref, t_ref, out_ref, *, loss_type: str, n_cls: int,
                  valid_l: int, rows: int, n_inner: int, last_tile: int,
                  needs_mask: bool):
    i = pl.program_id(2)
    rt = pl.program_id(1) * n_inner + i          # global row-tile index

    @pl.when(i == 0)
    def _init():
        out_ref[...] = jnp.zeros_like(out_ref)

    t = t_ref[...].astype(jnp.int32)             # (rows, 128) pixel targets

    if loss_type == "softmax":
        # per-pixel log-softmax over the (unrolled) class axis — all VPU/EUP,
        # no cross-sublane reductions.
        xs = [x_ref[c].astype(jnp.float32) for c in range(n_cls)]
        m = xs[0]
        for c in range(1, n_cls):
            m = jnp.maximum(m, xs[c])
        xm = [xs[c] - m for c in range(n_cls)]
        es = [jnp.exp(v) for v in xm]
        z = es[0]
        for c in range(1, n_cls):
            z = z + es[c]
        logz = jnp.log(z)                        # once per pixel
        invz = pl.reciprocal(z)                  # once per pixel
        acc = None
        for c in range(n_cls):
            logp = jnp.maximum(xm[c] - logz, -100.0)       # log p, clamped
            p = jnp.minimum(es[c] * invz, 1.0)             # keep 1-p >= 0
            log1mp = jnp.maximum(jnp.log(1.0 - p), -100.0)  # log(1-p), clamped
            bce_c = -jnp.where(t == c, logp, log1mp)       # select-based one-hot
            acc = bce_c if acc is None else acc + bce_c
    else:  # 'sigmoid' — BCEWithLogitsLoss: max(x,0) - x*y + log(1+exp(-|x|))
        acc = None
        for c in range(n_cls):
            xc = x_ref[c].astype(jnp.float32)
            bce_c = (jnp.maximum(xc, 0.0) - jnp.where(t == c, xc, 0.0)
                     + jnp.log(1.0 + jnp.exp(-jnp.abs(xc))))
            acc = bce_c if acc is None else acc + bce_c

    def _fold_rows_to8(a):
        # pairwise tree fold (rows is 8 * 2^k) -> (8, 128); pure VALU adds.
        r = a.shape[0]
        while r > 8:
            h = r // 2
            a = a[:h] + a[h:]
            r = h
        return a

    if needs_mask:
        @pl.when(rt == last_tile)
        def _tail():
            # only the last row-tile contains padded / out-of-range pixels
            row = jax.lax.broadcasted_iota(jnp.int32, (rows, 128), 0)
            lane = jax.lax.broadcasted_iota(jnp.int32, (rows, 128), 1)
            pix = (rt * rows + row) * 128 + lane
            out_ref[...] += _fold_rows_to8(jnp.where(pix < valid_l, acc, 0.0))

        @pl.when(rt != last_tile)
        def _body():
            out_ref[...] += _fold_rows_to8(acc)
    else:
        out_ref[...] += _fold_rows_to8(acc)


# ----------------------------- wrapper ---------------------------------------


def _vmem_capacity_bytes() -> int:
    try:
        cap = int(getattr(pltpu.get_tpu_info(), "vmem_capacity_bytes", 0))
        if cap > 0:
            return cap
    except Exception:
        pass
    return 64 * 1024 * 1024          # conservative default (v7x per-TC VMEM)


def _pick_tile_rows(R: int, C: int, logit_bytes: int, tgt_bytes: int,
                    budget: int) -> int:
    # VMEM bytes per row of 128 pixels: double-buffered input blocks plus the
    # fp32 intermediates the softmax branch keeps live (x-m, exp, temps, acc).
    per_row = (2 * C * 128 * logit_bytes
               + 2 * 128 * tgt_bytes
               + (2 * C + 8) * 128 * 4)
    rows = max(8, budget // per_row)
    # power-of-two multiple of 8 (needed by the pairwise row fold), <= R
    p = 8
    while p * 2 <= min(rows, R):
        p *= 2
    return p


def bce_loss_2d(logit, target, loss_type: str = "softmax", tile_rows=None):
    """logit: (B, C, H, W) float; target: (B, H, W) int -> scalar loss."""
    if loss_type not in ("softmax", "sigmoid"):
        raise ValueError(f"unsupported loss_type: {loss_type}")

    B, C, H, W = logit.shape
    L = H * W
    N = B * L

    # Free reshapes of the contiguous NCHW tensor — no transpose.
    x = logit.reshape(B, C, L)
    t = target.reshape(B, L)                     # keep native (narrow) dtype

    # Pixels go on (sublane=rows, lane=128); pad L up to at least 8*128 so the
    # (8,128) block constraint always holds (tiny copy, only for small/odd L).
    L_pad = max(((L + 127) // 128) * 128, 8 * 128)
    if L_pad != L:
        x = jnp.pad(x, ((0, 0), (0, 0), (0, L_pad - L)))
        t = jnp.pad(t, ((0, 0), (0, L_pad - L)))
    R = L_pad // 128
    x = x.reshape(B, C, R, 128)
    t = t.reshape(B, R, 128)

    cap = _vmem_capacity_bytes()
    if tile_rows is None:
        budget = max(2 * 2**20, min(cap // 4, 16 * 2**20))
        tile_rows = _pick_tile_rows(R, C, jnp.dtype(x.dtype).itemsize,
                                    jnp.dtype(t.dtype).itemsize, budget)
    n_tiles = pl.cdiv(R, tile_rows)
    # expose a second parallel super-tile when B == 1 so both v7x TCs are busy
    if B == 1 and n_tiles == 1 and tile_rows > 8:
        tile_rows //= 2
        n_tiles = pl.cdiv(R, tile_rows)
    n_outer = 2 if (n_tiles % 2 == 0 and n_tiles >= 2) else 1
    n_inner = n_tiles // n_outer

    needs_mask = (n_tiles * tile_rows * 128 != L)

    kernel = functools.partial(
        _bce2d_kernel, loss_type=loss_type, n_cls=C, valid_l=L,
        rows=tile_rows, n_inner=n_inner, last_tile=n_tiles - 1,
        needs_mask=needs_mask)

    partials = pl.pallas_call(
        kernel,
        out_shape=jax.ShapeDtypeStruct((B, n_outer, 8, 128), jnp.float32),
        grid_spec=pltpu.PrefetchScalarGridSpec(
            num_scalar_prefetch=0,
            grid=(B, n_outer, n_inner),
            in_specs=[
                pl.BlockSpec((None, C, tile_rows, 128),
                             lambda b, o, i: (b, 0, o * n_inner + i, 0)),
                pl.BlockSpec((None, tile_rows, 128),
                             lambda b, o, i: (b, o * n_inner + i, 0)),
            ],
            out_specs=pl.BlockSpec((None, None, 8, 128),
                                   lambda b, o, i: (b, o, 0, 0)),
        ),
        compiler_params=pltpu.CompilerParams(
            dimension_semantics=("parallel", "parallel", "arbitrary"),
            vmem_limit_bytes=int(min(cap // 2, 64 * 2**20))),
    )(x, t)

    # tiny final reduction + 1/N normalization (PyTorch divides by B*H*W)
    return jnp.sum(partials) / float(N)


# ----------------------------- reference & test ------------------------------


def _reference_bce_loss_2d(logit, target, loss_type="softmax"):
    B, C, H, W = logit.shape
    x = jnp.transpose(logit, (0, 2, 3, 1)).reshape(-1, C).astype(jnp.float32)
    t = target.reshape(-1).astype(jnp.int32)
    y = jax.nn.one_hot(t, C, dtype=jnp.float32)
    if loss_type == "softmax":
        p = jax.nn.softmax(x, axis=1)
        loss = -(y * jnp.maximum(jnp.log(p), -100.0)
                 + (1.0 - y) * jnp.maximum(jnp.log(1.0 - p), -100.0))
    else:
        loss = (jnp.maximum(x, 0.0) - x * y
                + jnp.log(1.0 + jnp.exp(-jnp.abs(x))))
    return jnp.sum(loss) / (B * H * W)


if __name__ == "__main__":
    key = jax.random.PRNGKey(0)
    k1, k2 = jax.random.split(key)
    B, C, H, W = 2, 4, 16, 16
    logit = jax.random.normal(k1, (B, C, H, W), dtype=jnp.float32)
    target = jax.random.randint(k2, (B, H, W), 0, C, dtype=jnp.int32)

    # default path of the module: loss_type='softmax'
    loss = jax.block_until_ready(bce_loss_2d(logit, target, loss_type="softmax"))
    ref = jax.block_until_ready(_reference_bce_loss_2d(logit, target, "softmax"))
    assert jnp.allclose(loss, ref, rtol=1e-5, atol=1e-5), (loss, ref)

    # also exercise the 'sigmoid' branch of the module
    loss_s = jax.block_until_ready(bce_loss_2d(logit, target, loss_type="sigmoid"))
    ref_s = jax.block_until_ready(_reference_bce_loss_2d(logit, target, "sigmoid"))
    assert jnp.allclose(loss_s, ref_s, rtol=1e-5, atol=1e-5), (loss_s, ref_s)

    print("KERNEL_OK")
</pallas_src>

<mosaic_0001>
module attributes {stable_mosaic.version = 11 : i64} {
  func.func @_bce2d_kernel(%arg0: i32, %arg1: i32, %arg2: i32, %arg3: memref<1x4x8x128xf32, #tpu.memory_space<vmem>>, %arg4: memref<1x8x128xi32, #tpu.memory_space<vmem>>, %arg5: memref<1x1x8x128xf32, #tpu.memory_space<vmem>>) attributes {dimension_semantics = [#tpu.dimension_semantics<parallel>, #tpu.dimension_semantics<parallel>, #tpu.dimension_semantics<arbitrary>], iteration_bounds = array<i64: 2, 1, 1>, scalar_prefetch = 0 : i64, scratch_operands = 0 : i64, tpu.core_type = #tpu.core_type<tc>, window_params = [{transform_indices = @transform_0, window_bounds = array<i64: 1, 4, 8, 128>}, {transform_indices = @transform_1, window_bounds = array<i64: 1, 8, 128>}, {transform_indices = @transform_2, window_bounds = array<i64: 1, 1, 8, 128>}]} {
    %c1_i32 = arith.constant 1 : i32
    %0 = arith.muli %arg1, %c1_i32 : i32
    %1 = arith.addi %0, %arg2 : i32
    %c0_i32 = arith.constant 0 : i32
    %2 = arith.cmpi eq, %arg2, %c0_i32 : i32
    %3 = arith.extui %2 : i1 to i32
    %c0_i32_0 = arith.constant 0 : i32
    %4 = arith.cmpi ne, %3, %c0_i32_0 : i32
    scf.if %4 {
      %cst_41 = arith.constant 0.000000e+00 : f32
      %104 = vector.broadcast %cst_41 : f32 to vector<8x128xf32>
      %c0_42 = arith.constant 0 : index
      %c0_43 = arith.constant 0 : index
      %c0_44 = arith.constant 0 : index
      %c0_45 = arith.constant 0 : index
      %105 = vector.load %arg5[%c0_42, %c0_43, %c0_44, %c0_45] : memref<1x1x8x128xf32, #tpu.memory_space<vmem>>, vector<1x1x8x128xf32>
      %106 = vector.shape_cast %105 : vector<1x1x8x128xf32> to vector<8x128xf32>
      %107 = vector.shape_cast %104 : vector<8x128xf32> to vector<1x1x8x128xf32>
      tpu.vector_store %arg5[%c0_42, %c0_43, %c0_44, %c0_45], %107 {strides = array<i32>} : memref<1x1x8x128xf32, #tpu.memory_space<vmem>>, vector<1x1x8x128xf32>,
    } else {
    }
    %c0 = arith.constant 0 : index
    %c0_1 = arith.constant 0 : index
    %c0_2 = arith.constant 0 : index
    %5 = vector.load %arg4[%c0, %c0_1, %c0_2] : memref<1x8x128xi32, #tpu.memory_space<vmem>>, vector<1x8x128xi32>
    %6 = vector.shape_cast %5 : vector<1x8x128xi32> to vector<8x128xi32>
    %c0_3 = arith.constant 0 : index
    %c0_4 = arith.constant 0 : index
    %c0_5 = arith.constant 0 : index
    %c0_6 = arith.constant 0 : index
    %7 = vector.load %arg3[%c0_3, %c0_4, %c0_5, %c0_6] : memref<1x4x8x128xf32, #tpu.memory_space<vmem>>, vector<1x1x8x128xf32>
    %8 = vector.shape_cast %7 : vector<1x1x8x128xf32> to vector<8x128xf32>
    %c0_7 = arith.constant 0 : index
    %c1 = arith.constant 1 : index
    %c0_8 = arith.constant 0 : index
    %c0_9 = arith.constant 0 : index
    %9 = vector.load %arg3[%c0_7, %c1, %c0_8, %c0_9] : memref<1x4x8x128xf32, #tpu.memory_space<vmem>>, vector<1x1x8x128xf32>
    %10 = vector.shape_cast %9 : vector<1x1x8x128xf32> to vector<8x128xf32>
    %c0_10 = arith.constant 0 : index
    %c2 = arith.constant 2 : index
    %c0_11 = arith.constant 0 : index
    %c0_12 = arith.constant 0 : index
    %11 = vector.load %arg3[%c0_10, %c2, %c0_11, %c0_12] : memref<1x4x8x128xf32, #tpu.memory_space<vmem>>, vector<1x1x8x128xf32>
    %12 = vector.shape_cast %11 : vector<1x1x8x128xf32> to vector<8x128xf32>
    %c0_13 = arith.constant 0 : index
    %c3 = arith.constant 3 : index
    %c0_14 = arith.constant 0 : index
    %c0_15 = arith.constant 0 : index
    %13 = vector.load %arg3[%c0_13, %c3, %c0_14, %c0_15] : memref<1x4x8x128xf32, #tpu.memory_space<vmem>>, vector<1x1x8x128xf32>
    %14 = vector.shape_cast %13 : vector<1x1x8x128xf32> to vector<8x128xf32>
    %15 = arith.maximumf %8, %10 : vector<8x128xf32>
    %16 = arith.maximumf %15, %12 : vector<8x128xf32>
    %17 = arith.maximumf %16, %14 : vector<8x128xf32>
    %18 = arith.subf %8, %17 : vector<8x128xf32>
    %19 = arith.subf %10, %17 : vector<8x128xf32>
    %20 = arith.subf %12, %17 : vector<8x128xf32>
    %21 = arith.subf %14, %17 : vector<8x128xf32>
    %22 = math.exp %18 : vector<8x128xf32>
    %23 = math.exp %19 : vector<8x128xf32>
    %24 = math.exp %20 : vector<8x128xf32>
    %25 = math.exp %21 : vector<8x128xf32>
    %26 = arith.addf %22, %23 : vector<8x128xf32>
    %27 = arith.addf %26, %24 : vector<8x128xf32>
    %28 = arith.addf %27, %25 : vector<8x128xf32>
    %29 = math.log %28 : vector<8x128xf32>
    %30 = tpu.reciprocal %28 : vector<8x128xf32> -> vector<8x128xf32>
    %31 = arith.subf %18, %29 : vector<8x128xf32>
    %cst = arith.constant -1.000000e+02 : f32
    %32 = vector.broadcast %cst : f32 to vector<8x128xf32>
    %33 = arith.maximumf %31, %32 : vector<8x128xf32>
    %34 = arith.mulf %22, %30 : vector<8x128xf32>
    %cst_16 = arith.constant 1.000000e+00 : f32
    %35 = vector.broadcast %cst_16 : f32 to vector<8x128xf32>
    %36 = arith.minimumf %34, %35 : vector<8x128xf32>
    %cst_17 = arith.constant 1.000000e+00 : f32
    %37 = vector.broadcast %cst_17 : f32 to vector<8x128xf32>
    %38 = arith.subf %37, %36 : vector<8x128xf32>
    %39 = math.log %38 : vector<8x128xf32>
    %cst_18 = arith.constant -1.000000e+02 : f32
    %40 = vector.broadcast %cst_18 : f32 to vector<8x128xf32>
    %41 = arith.maximumf %39, %40 : vector<8x128xf32>
    %c0_i32_19 = arith.constant 0 : i32
    %42 = vector.broadcast %c0_i32_19 : i32 to vector<8x128xi32>
    %43 = arith.cmpi eq, %6, %42 : vector<8x128xi32>
    %44 = arith.select %43, %33, %41 : vector<8x128xi1>, vector<8x128xf32>
    %cst_20 = arith.constant 0.000000e+00 : f32
    %45 = vector.broadcast %cst_20 : f32 to vector<8x128xf32>
    %46 = arith.subf %45, %44 : vector<8x128xf32>
    %47 = arith.subf %19, %29 : vector<8x128xf32>
    %cst_21 = arith.constant -1.000000e+02 : f32
    %48 = vector.broadcast %cst_21 : f32 to vector<8x128xf32>
    %49 = arith.maximumf %47, %48 : vector<8x128xf32>
    %50 = arith.mulf %23, %30 : vector<8x128xf32>
    %cst_22 = arith.constant 1.000000e+00 : f32
    %51 = vector.broadcast %cst_22 : f32 to vector<8x128xf32>
    %52 = arith.minimumf %50, %51 : vector<8x128xf32>
    %cst_23 = arith.constant 1.000000e+00 : f32
    %53 = vector.broadcast %cst_23 : f32 to vector<8x128xf32>
    %54 = arith.subf %53, %52 : vector<8x128xf32>
    %55 = math.log %54 : vector<8x128xf32>
    %cst_24 = arith.constant -1.000000e+02 : f32
    %56 = vector.broadcast %cst_24 : f32 to vector<8x128xf32>
    %57 = arith.maximumf %55, %56 : vector<8x128xf32>
    %c1_i32_25 = arith.constant 1 : i32
    %58 = vector.broadcast %c1_i32_25 : i32 to vector<8x128xi32>
    %59 = arith.cmpi eq, %6, %58 : vector<8x128xi32>
    %60 = arith.select %59, %49, %57 : vector<8x128xi1>, vector<8x128xf32>
    %cst_26 = arith.constant 0.000000e+00 : f32
    %61 = vector.broadcast %cst_26 : f32 to vector<8x128xf32>
    %62 = arith.subf %61, %60 : vector<8x128xf32>
    %63 = arith.addf %46, %62 : vector<8x128xf32>
    %64 = arith.subf %20, %29 : vector<8x128xf32>
    %cst_27 = arith.constant -1.000000e+02 : f32
    %65 = vector.broadcast %cst_27 : f32 to vector<8x128xf32>
    %66 = arith.maximumf %64, %65 : vector<8x128xf32>
    %67 = arith.mulf %24, %30 : vector<8x128xf32>
    %cst_28 = arith.constant 1.000000e+00 : f32
    %68 = vector.broadcast %cst_28 : f32 to vector<8x128xf32>
    %69 = arith.minimumf %67, %68 : vector<8x128xf32>
    %cst_29 = arith.constant 1.000000e+00 : f32
    %70 = vector.broadcast %cst_29 : f32 to vector<8x128xf32>
    %71 = arith.subf %70, %69 : vector<8x128xf32>
    %72 = math.log %71 : vector<8x128xf32>
    %cst_30 = arith.constant -1.000000e+02 : f32
    %73 = vector.broadcast %cst_30 : f32 to vector<8x128xf32>
    %74 = arith.maximumf %72, %73 : vector<8x128xf32>
    %c2_i32 = arith.constant 2 : i32
    %75 = vector.broadcast %c2_i32 : i32 to vector<8x128xi32>
    %76 = arith.cmpi eq, %6, %75 : vector<8x128xi32>
    %77 = arith.select %76, %66, %74 : vector<8x128xi1>, vector<8x128xf32>
    %cst_31 = arith.constant 0.000000e+00 : f32
    %78 = vector.broadcast %cst_31 : f32 to vector<8x128xf32>
    %79 = arith.subf %78, %77 : vector<8x128xf32>
    %80 = arith.addf %63, %79 : vector<8x128xf32>
    %81 = arith.subf %21, %29 : vector<8x128xf32>
    %cst_32 = arith.constant -1.000000e+02 : f32
    %82 = vector.broadcast %cst_32 : f32 to vector<8x128xf32>
    %83 = arith.maximumf %81, %82 : vector<8x128xf32>
    %84 = arith.mulf %25, %30 : vector<8x128xf32>
    %cst_33 = arith.constant 1.000000e+00 : f32
    %85 = vector.broadcast %cst_33 : f32 to vector<8x128xf32>
    %86 = arith.minimumf %84, %85 : vector<8x128xf32>
    %cst_34 = arith.constant 1.000000e+00 : f32
    %87 = vector.broadcast %cst_34 : f32 to vector<8x128xf32>
    %88 = arith.subf %87, %86 : vector<8x128xf32>
    %89 = math.log %88 : vector<8x128xf32>
    %cst_35 = arith.constant -1.000000e+02 : f32
    %90 = vector.broadcast %cst_35 : f32 to vector<8x128xf32>
    %91 = arith.maximumf %89, %90 : vector<8x128xf32>
    %c3_i32 = arith.constant 3 : i32
    %92 = vector.broadcast %c3_i32 : i32 to vector<8x128xi32>
    %93 = arith.cmpi eq, %6, %92 : vector<8x128xi32>
    %94 = arith.select %93, %83, %91 : vector<8x128xi1>, vector<8x128xf32>
    %cst_36 = arith.constant 0.000000e+00 : f32
    %95 = vector.broadcast %cst_36 : f32 to vector<8x128xf32>
    %96 = arith.subf %95, %94 : vector<8x128xf32>
    %97 = arith.addf %80, %96 : vector<8x128xf32>
    %c0_i32_37 = arith.constant 0 : i32
    %98 = arith.cmpi eq, %1, %c0_i32_37 : i32
    %99 = arith.extui %98 : i1 to i32
    %c0_i32_38 = arith.constant 0 : i32
    %100 = arith.cmpi ne, %99, %c0_i32_38 : i32
    scf.if %100 {
      %104 = tpu.iota {dimensions = array<i32: 0>} : vector<8x128xi32>
      %105 = tpu.iota {dimensions = array<i32: 1>} : vector<8x128xi32>
      %c8_i32 = arith.constant 8 : i32
      %106 = arith.muli %1, %c8_i32 : i32
      %107 = vector.broadcast %106 : i32 to vector<8x128xi32>
      %108 = arith.addi %107, %104 : vector<8x128xi32>
      %c128_i32 = arith.constant 128 : i32
      %109 = vector.broadcast %c128_i32 : i32 to vector<8x128xi32>
      %110 = arith.muli %108, %109 : vector<8x128xi32>
      %111 = arith.addi %110, %105 : vector<8x128xi32>
      %c0_41 = arith.constant 0 : index
      %c0_42 = arith.constant 0 : index
      %c0_43 = arith.constant 0 : index
      %c0_44 = arith.constant 0 : index
      %112 = vector.load %arg5[%c0_41, %c0_42, %c0_43, %c0_44] : memref<1x1x8x128xf32, #tpu.memory_space<vmem>>, vector<1x1x8x128xf32>
      %113 = vector.shape_cast %112 : vector<1x1x8x128xf32> to vector<8x128xf32>
      %c256_i32 = arith.constant 256 : i32
      %114 = vector.broadcast %c256_i32 : i32 to vector<8x128xi32>
      %115 = arith.cmpi slt, %111, %114 : vector<8x128xi32>
      %cst_45 = arith.constant 0.000000e+00 : f32
      %116 = vector.broadcast %cst_45 : f32 to vector<8x128xf32>
      %117 = arith.select %115, %97, %116 : vector<8x128xi1>, vector<8x128xf32>
      %118 = arith.addf %113, %117 : vector<8x128xf32>
      %c0_46 = arith.constant 0 : index
      %c0_47 = arith.constant 0 : index
      %c0_48 = arith.constant 0 : index
      %c0_49 = arith.constant 0 : index
      %119 = vector.load %arg5[%c0_46, %c0_47, %c0_48, %c0_49] : memref<1x1x8x128xf32, #tpu.memory_space<vmem>>, vector<1x1x8x128xf32>
      %120 = vector.shape_cast %119 : vector<1x1x8x128xf32> to vector<8x128xf32>
      %121 = vector.shape_cast %118 : vector<8x128xf32> to vector<1x1x8x128xf32>
      tpu.vector_store %arg5[%c0_46, %c0_47, %c0_48, %c0_49], %121 {strides = array<i32>} : memref<1x1x8x128xf32, #tpu.memory_space<vmem>>, vector<1x1x8x128xf32>,
    } else {
    }
    %c0_i32_39 = arith.constant 0 : i32
    %101 = arith.cmpi ne, %1, %c0_i32_39 : i32
    %102 = arith.extui %101 : i1 to i32
    %c0_i32_40 = arith.constant 0 : i32
    %103 = arith.cmpi ne, %102, %c0_i32_40 : i32
    scf.if %103 {
      %c0_41 = arith.constant 0 : index
      %c0_42 = arith.constant 0 : index
      %c0_43 = arith.constant 0 : index
      %c0_44 = arith.constant 0 : index
      %104 = vector.load %arg5[%c0_41, %c0_42, %c0_43, %c0_44] : memref<1x1x8x128xf32, #tpu.memory_space<vmem>>, vector<1x1x8x128xf32>
      %105 = vector.shape_cast %104 : vector<1x1x8x128xf32> to vector<8x128xf32>
      %106 = arith.addf %105, %97 : vector<8x128xf32>
      %c0_45 = arith.constant 0 : index
      %c0_46 = arith.constant 0 : index
      %c0_47 = arith.constant 0 : index
      %c0_48 = arith.constant 0 : index
      %107 = vector.load %arg5[%c0_45, %c0_46, %c0_47, %c0_48] : memref<1x1x8x128xf32, #tpu.memory_space<vmem>>, vector<1x1x8x128xf32>
      %108 = vector.shape_cast %107 : vector<1x1x8x128xf32> to vector<8x128xf32>
      %109 = vector.shape_cast %106 : vector<8x128xf32> to vector<1x1x8x128xf32>
      tpu.vector_store %arg5[%c0_45, %c0_46, %c0_47, %c0_48], %109 {strides = array<i32>} : memref<1x1x8x128xf32, #tpu.memory_space<vmem>>, vector<1x1x8x128xf32>,
    } else {
    }
    return
  }
  func.func @transform_0(%arg0: i32, %arg1: i32, %arg2: i32) -> (i32, i32, i32, i32) {
    %c1_i32 = arith.constant 1 : i32
    %0 = arith.muli %arg1, %c1_i32 : i32
    %1 = arith.addi %0, %arg2 : i32
    %c0_i32 = arith.constant 0 : i32
    %c0_i32_0 = arith.constant 0 : i32
    %c0_i32_1 = arith.constant 0 : i32
    return %arg0, %c0_i32, %1, %c0_i32_0 : i32, i32, i32, i32
  }
  func.func @transform_1(%arg0: i32, %arg1: i32, %arg2: i32) -> (i32, i32, i32) {
    %c1_i32 = arith.constant 1 : i32
    %0 = arith.muli %arg1, %c1_i32 : i32
    %1 = arith.addi %0, %arg2 : i32
    %c0_i32 = arith.constant 0 : i32
    %c0_i32_0 = arith.constant 0 : i32
    return %arg0, %1, %c0_i32 : i32, i32, i32
  }
  func.func @transform_2(%arg0: i32, %arg1: i32, %arg2: i32) -> (i32, i32, i32, i32) {
    %c0_i32 = arith.constant 0 : i32
    %c0_i32_0 = arith.constant 0 : i32
    %c0_i32_1 = arith.constant 0 : i32
    return %arg0, %arg1, %c0_i32, %c0_i32_0 : i32, i32, i32, i32
  }
}

</mosaic_0001>

<bundles_post_ra>
// kernel: tpu_custom_call.1
= control target key start
LH: loop header
LB: loop body
LE: loop exit
PB: predicated region body
PF: predicated region fallthrough
CT: control target
= control target key end

     0   :  { %7 = vsyncpa [#allocation3], 0  ;;  %s967_s0 = inlined_call_operand.hbm [shape: f32[2,4,8,128], index: 0, kind: input, shape index: {}]   ;;  %s968_s1 = inlined_call_operand.hbm [shape: s32[2,8,128], index: 1, kind: input, shape index: {}]   ;;  %s969_s2 = inlined_call_operand.hbm [shape: f32[2,1,8,128], index: 2, kind: output, shape index: {}]  }
   0x1   :  { %9 = vsyncpa [#allocation3 + $0x1], 0 }
   0x2   :  { %10 = vsyncpa [#allocation6], 0 }
   0x3   :  { %12 = vsyncpa [#allocation6 + $0x1], 0 }
   0x4   :  { %13 = vsyncpa [#allocation4], 0 }
   0x5   :  { %15 = vsyncpa [#allocation4 + $0x1], 0  ;;  %s745_s9 = smov 0   ;;  %s747_s10 = smov 0  }
   0x6   :  { %s749_s11 = smov 0   ;;  %s751_s12 = smov 0  }
   0x7   :  { %s753_s13 = smov 0   ;;  %s755_s14 = smov 0  }
   0x8 LB: > { %s466_s15 = sadd.s32 4294967295, %s723_s14   ;;  %s467_s16 = sadd.s32 4294967294, %s723_s14   ;;  %s723_s14 = sphi %s755_s14, %s21_s14   ;;  %s719_s13 = sphi %s753_s13, %s988_s13   ;;  %s715_s12 = sphi %s751_s12, %s987_s12   ;;  %s711_s11 = sphi %s749_s11, %s986_s11   ;;  %s707_s10 = sphi %s747_s10, %s985_s10   ;;  %s703_s9 = sphi %s745_s9, %s984_s9  }
   0x9   : > { %s40_s17 = sadd.s32 1, %s719_s13  ;;  %s51_s18 = sadd.s32 1, %s711_s11 }
   0xa   : > { %p42_p0 = scmp.ge.s32.totalorder %s40_s17, 2  ;;  %p58_p1 = scmp.ne.s32.totalorder %s711_s11, %s707_s10 }
   0xb   : > { %p59_p2 = scmp.eq.s32.totalorder %s723_s14, 0  ;;  %p64_p3 = scmp.ne.s32.totalorder %s707_s10, %s703_s9 }
   0xc   : > { %s990_s17 = smov (%p42_p0, %s40_s17), 0  ;;  %p65_p5 = scmp.eq.s32.totalorder %s466_s15, 0 }
   0xd   : > { %p786_p4 = por %p59_p2, %p58_p1  ;;  %s46_s20 = ssub.s32 %s719_s13, %s990_s17 }
   0xe   : > { %p120_p6 = scmp.eq.s32.totalorder %s466_s15, 1  ;;  %p49_p7 = scmp.eq.s32.totalorder %s46_s20, 0 }
   0xf   : > { %p792_p8 = por %p65_p5, %p64_p3  ;;  %p126_p10 = scmp.eq.s32.totalorder %s467_s16, 1 }
  0x10   : > { %p796_p9 = por %p120_p6, %p58_p1  ;;  %p504_p13 = scmp.lt.s32.totalorder %s723_s14, 2 }
  0x11   : > { %s973_s21 = scalar_select %p792_p8, 1, 0 }
  0x12   : > { %s974_s22 = scalar_select %p796_p9, 1, 0 }
  0x13   : > { %s801_s23 = scalar_select %p49_p7, %s711_s11, %s51_s18  }
  0x14   : > { %p803_p11 = por %p126_p10, %p64_p3  ;;  %s810_s25 = sand.u32 1, %s711_s11  }
  0x15   : > { %s470_s26 = sshll.u32 %s810_s25, 5  ;;  %s486_s27 = sshll.u32 %s719_s13, 9 }
  0x16   : > { %s975_s24 = scalar_select %p803_p11, 1, 0 }
  0x17   : > { %s817_s30 = scalar_lea.hbm %s967_s0, %s486_s27  ;;  %s150_s3 = scalar_lea.vmem [#allocation2], %s470_s26 }
  0x18   : > { %s159_s4 = sshll.u32 %s150_s3, 4  ;;  %p823_p0 = pnand %p504_p13, %p786_p4  ;;  %s819_s4 = int_to_ptr.vmem [resolvable:$true] %s159_s4 }
  0x19   : > { %s147_s6 = scalar_lea.sflag [#allocation3], %s810_s25  ;;  %s577_s7 = scalar_lea.hbm %s817_s30, 512 }
  0x1a   : > { %p578_p2 = scmp.ne.s32.totalorder %s817_s30, %s577_s7  ;;  %p579_p3 = pneg %p823_p0 }
  0x1b   : > { %s582_s16 = scalar_lea.hbm %s967_s0, 1024  ;;  %p583_p4 = scmp.lt.u32.totalorder %s817_s30, %s967_s0 }
  0x1c   : > { %p580_p5 = pnand %p579_p3, %p578_p2  ;;  %p584_p7 = scmp.lt.u32.totalorder %s582_s16, %s577_s7 }
  0x1d   : > { %p586_p13 = scmp.lt.u32.totalorder %s577_s7, %s817_s30 }
  0x1e   : > { %p581_p6 = pneg %p580_p5  ;;  %p585_p10 = por %p584_p7, %p583_p4 }
  0x20   : > { %p587_p12 = por %p586_p13, %p585_p10 }
  0x22   : > { %p588_p1 = pnand %p587_p12, %p581_p6 }
  0x24   : > { %591 = shalt.err (!%p588_p1)
}
  0x25   : > { %s592_s20 = scalar_lea.vmem %s819_s4, 512  ;;  %s725_s26 = smov [#allocation2]  }
  0x26   : > { %p593_p2 = scmp.ne.s32.totalorder %s819_s4, %s592_s20  ;;  %s597_s27 = sshll.u32 %s725_s26, 4  ;;  %s598_s27 = int_to_ptr.vmem [resolvable:$false] %s597_s27 }
  0x27   : > { %s599_s28 = scalar_lea.vmem %s598_s27, 1024  ;;  %p600_p9 = scmp.lt.s32.totalorder %s819_s4, %s598_s27 }
  0x28   : > { %p595_p5 = pnand %p593_p2, %p579_p3  ;;  %p601_p4 = scmp.lt.s32.totalorder %s599_s28, %s592_s20 }
  0x2a   : > { %p596_p11 = pneg %p595_p5  ;;  %p602_p7 = por %p601_p4, %p600_p9 }
  0x2c   : > { %p603_p10 = pnand %p602_p7, %p596_p11 }
  0x2e   : > { %606 = shalt.err (!%p603_p10)
}
  0x2f   : > { %s726_s29 = smov 128   ;;  %s727_s3 = smov 8  }
  0x30   : > { %496 = dma.hbm_to_vmem [thread:$0]  (!%p823_p0), %s817_s30, 512, %s819_s4, %s147_s6, %s726_s29, %s726_s29, %s727_s3  }
  0x31   : > { %p187_p12 = scmp.lt.s32.totalorder %s723_s14, 3  ;;  %s473_s7 = sshll.u32 %s810_s25, 3 }
  0x32   : > { %s474_s8 = sshll.u32 %s719_s13, 7  ;;  %p977_p9 = scmp.ge.s32.totalorder %s723_s14, 1 }
  0x33   : > { %s868_s19 = scalar_lea.hbm %s968_s1, %s474_s8  ;;  %s173_s20 = scalar_lea.vmem [#allocation5], %s473_s7 }
  0x34   : > { %p861_p11 = pnand %p977_p9, %p187_p12  ;;  %s182_s26 = sshll.u32 %s173_s20, 4  ;;  %s183_s26 = int_to_ptr.vmem [resolvable:$true] %s182_s26 }
  0x35   : > { %s170_s30 = scalar_lea.sflag [#allocation6], %s810_s25  ;;  %s607_s4 = scalar_lea.hbm %s868_s19, 128 }
  0x36   : > { %s978_s15 = scalar_select %p861_p11, 1, 0 }
  0x37   : > { %p608_p1 = scmp.ne.s32.totalorder %s868_s19, %s607_s4  ;;  %s612_s28 = scalar_lea.hbm %s968_s1, 256 }
  0x38   : > { %p613_p2 = scmp.lt.u32.totalorder %s868_s19, %s968_s1  ;;  %p614_p5 = scmp.lt.u32.totalorder %s612_s28, %s607_s4 }
  0x39   : > { %p610_p6 = pnand %p608_p1, %p579_p3  ;;  %p616_p7 = scmp.lt.u32.totalorder %s607_s4, %s868_s19 }
  0x3a   : > { %p615_p4 = por %p614_p5, %p613_p2 }
  0x3b   : > { %p611_p13 = pneg %p610_p6 }
  0x3c   : > { %p617_p10 = por %p616_p7, %p615_p4 }
  0x3e   : > { %p618_p12 = pnand %p617_p10, %p611_p13 }
  0x40   : > { %621 = shalt.err (!%p618_p12)
}
  0x41   : > { %s622_s25 = scalar_lea.vmem %s183_s26, 128  ;;  %s728_s7 = smov [#allocation5]  }
  0x42   : > { %p623_p9 = scmp.ne.s32.totalorder %s183_s26, %s622_s25  ;;  %s627_s8 = sshll.u32 %s728_s7, 4  ;;  %s628_s8 = int_to_ptr.vmem [resolvable:$false] %s627_s8 }
  0x43   : > { %s629_s16 = scalar_lea.vmem %s628_s8, 256  ;;  %p630_p8 = scmp.lt.s32.totalorder %s183_s26, %s628_s8 }
  0x44   : > { %p625_p1 = pnand %p623_p9, %p579_p3  ;;  %p631_p11 = scmp.lt.s32.totalorder %s629_s16, %s622_s25 }
  0x46   : > { %p626_p6 = pneg %p625_p1  ;;  %p632_p2 = por %p631_p11, %p630_p8 }
  0x48   : > { %p633_p5 = pnand %p632_p2, %p626_p6 }
  0x4a   : > { %636 = shalt.err (!%p633_p5)
}
  0x4b   : > { %499 = dma.hbm_to_vmem [thread:$0]  (!%p823_p0), %s868_s19, 128, %s183_s26, %s170_s30  }
  0x4c   : > { %p979_p13 = scmp.ne.s32.totalorder %s978_s15, 0 }
  0x4d   : > { %s893_s18 = sand.u32 (!%p979_p13), 1, %s707_s10   ;;  %p980_p3 = scmp.ne.s32.totalorder (!%p979_p13), %s973_s21, 0 }
  0x4e   : > { %191 = sbr.rel (%p979_p13) target bundleno = 175 (0xaf), region = 28  ;;  %s476_s20 = sshll.u32 (!%p979_p13), %s893_s18, 5 }
  0x4f   : > { %s194_s4 = scalar_lea.sflag (!%p979_p13), [#allocation3], %s893_s18  ;;  %s197_s6 = scalar_lea.vmem (!%p979_p13), [#allocation2], %s476_s20 }
  0x55   : > { %690 = dma.done.wait (%p980_p3), %s194_s4, 512  }
  0x56   : > { %692 = vsyncadd (%p980_p3), %s194_s4, 4294966784  ;;  %s477_s5 = sshll.u32 %s893_s18, 3  ;;  %s203_s15 = scalar_lea.sflag [#allocation6], %s893_s18 }
  0x57   : > { %s905_s19 = scalar_lea.vmem [#allocation5], %s477_s5 }
  0x58   : > { %694 = dma.done.wait (%p980_p3), %s203_s15, 128  }
  0x59   : > { %696 = vsyncadd (%p980_p3), %s203_s15, 4294967168  ;;  %v241_v0 = vld [vmem:[%s197_s6] sm:$0xff]  ;;  %v479_v1 = vld [vmem:[%s197_s6 + $0x8] sm:$0xff]  ;;  %v320_v37 = vlaneseq  ;;  %s483_s21 = sshll.u32 %s715_s12, 7  ;;  %s231_s26 = scalar_lea.vmem [#allocation7], %s477_s5 }
  0x5a   : > { %v480_v2 = vld [vmem:[%s197_s6 + $0x10] sm:$0xff]  ;;  %v248_v3 = vmax.f32 %v241_v0, %v479_v1  ;;  %v481_v4 = vld [vmem:[%s197_s6 + $0x18] sm:$0xff]  ;;  %v240_v41 = vld [vmem:[%s905_s19] sm:$0xff]  ;;  %s356_s30 = sshll.u32 %s231_s26, 4  ;;  %s918_s29 = scalar_lea.hbm %s969_s2, %s483_s21  ;;  %s920_s30 = int_to_ptr.vmem [resolvable:$true] %s356_s30 }
  0x5b   : > { %v321_v40 = vshrl.u32 %v320_v37, 7  ;;  %v323_v48 = vand.u32 127, %v320_v37  ;;  %vm277_vm0 = vcmp.eq.s32.totalorder %v240_v41, 0  ;;  %vm288_vm1 = vcmp.eq.s32.totalorder %v240_v41, 1  ;;  %s342_s3 = scalar_lea.sflag [#allocation4], %s893_s18  ;;  %s637_s25 = scalar_lea.vmem %s920_s30, 128 }
  0x5c   : > { %v249_v5 = vmax.f32 %v248_v3, %v480_v2  ;;  %vm300_vm2 = vcmp.eq.s32.totalorder %v240_v41, 2  ;;  %vm312_vm3 = vcmp.eq.s32.totalorder %v240_v41, 3  ;;  %p638_p8 = scmp.ne.s32.totalorder %s920_s30, %s637_s25  ;;  %p981_p0 = scmp.ne.s32.totalorder %s974_s22, 0 }
  0x5d   : > { %v327_v52 = vmul.u32 128, %v321_v40  ;;  %s729_s12 = smov [#allocation7]  }
  0x5e   : > { %v250_v6 = vmax.f32 %v249_v5, %v481_v4  ;;  %p639_p11 = pnand %p638_p8, %p981_p0  ;;  %s641_s7 = sshll.u32 %s729_s12, 4  ;;  %s642_s7 = int_to_ptr.vmem [resolvable:$false] %s641_s7 }
  0x5f   : > { %v328_v5 = vadd.s32 %v327_v52, %v323_v48  ;;  %s643_s8 = scalar_lea.vmem %s642_s7, 256  ;;  %p644_p7 = scmp.lt.s32.totalorder %s920_s30, %s642_s7 }
  0x60   : > { %v251_v7 = vsub.f32 %v241_v0, %v250_v6  ;;  %v252_v8 = vsub.f32 %v479_v1, %v250_v6  ;;  %v253_v9 = vsub.f32 %v480_v2, %v250_v6  ;;  %v254_v10 = vsub.f32 %v481_v4, %v250_v6  ;;  %p640_p4 = pneg %p639_p11  ;;  %p645_p10 = scmp.lt.s32.totalorder %s643_s8, %s637_s25 }
  0x61   : > { %vm330_vm4 = vcmp.lt.s32.totalorder %v328_v5, 256 }
  0x62   : > { %v255_v11 = vmul.f32 1.442695, %v251_v7  ;;  %v257_v12 = vmul.f32 1.442695, %v252_v8  ;;  %v259_v13 = vmul.f32 1.442695, %v253_v9  ;;  %p646_p12 = por %p645_p10, %p644_p7 }
  0x63   : > { %v261_v14 = vmul.f32 1.442695, %v254_v10 }
  0x64   : > { %557 = vpow2.f32 %v255_v11  ;;  %p647_p9 = pnand %p646_p12, %p640_p4 }
  0x65   : > { %559 = vpow2.f32 %v257_v12 }
  0x66   : > { %561 = vpow2.f32 %v259_v13 }
  0x67   : > { %563 = vpow2.f32 %v261_v14 }
  0x6e   : > { %v558_v15 = vpop.eup %557 }
  0x6f   : > { %v560_v16 = vpop.eup %559 }
  0x70   : > { %v562_v17 = vpop.eup %561  ;;  %v263_v18 = vadd.f32 %v560_v16, %v558_v15 }
  0x71   : > { %v564_v19 = vpop.eup %563 }
  0x72   : > { %v264_v20 = vadd.f32 %v562_v17, %v263_v18 }
  0x74   : > { %v265_v21 = vadd.f32 %v564_v19, %v264_v20 }
  0x76   : > { %565 = vrcp.f32 %v265_v21 }
  0x77   : > { %567 = vlog2.f32 %v265_v21 }
  0x80   : > { %v566_v22 = vpop.eup %565 }
  0x81   : > { %v271_v23 = vmul.f32 %v566_v22, %v558_v15  ;;  %v282_v24 = vmul.f32 %v566_v22, %v560_v16  ;;  %v294_v25 = vmul.f32 %v566_v22, %v562_v17  ;;  %v306_v26 = vmul.f32 %v566_v22, %v564_v19  ;;  %v568_v35 = vpop.eup %567 }
  0x82   : > { %v267_v36 = vmul.f32 0.6931472, %v568_v35 }
  0x83   : > { %v272_v27 = vmin.f32 %v271_v23, 1.0  ;;  %v283_v28 = vmin.f32 %v282_v24, 1.0  ;;  %v295_v29 = vmin.f32 %v294_v25, 1.0  ;;  %v307_v30 = vmin.f32 %v306_v26, 1.0 }
  0x84   : > { %v269_v38 = vsub.f32 %v251_v7, %v267_v36  ;;  %v280_v39 = vsub.f32 %v252_v8, %v267_v36  ;;  %v292_v42 = vsub.f32 %v253_v9, %v267_v36  ;;  %v304_v44 = vsub.f32 %v254_v10, %v267_v36 }
  0x85   : > { %v273_v31 = vsub.f32 1.0, %v272_v27  ;;  %v284_v32 = vsub.f32 1.0, %v283_v28  ;;  %v296_v33 = vsub.f32 1.0, %v295_v29  ;;  %v308_v34 = vsub.f32 1.0, %v307_v30 }
  0x86   : > { %v270_v46 = vmax.f32 %v269_v38, -100.0  ;;  %v281_v50 = vmax.f32 %v280_v39, -100.0  ;;  %v293_v55 = vmax.f32 %v292_v42, -100.0  ;;  %v305_v58 = vmax.f32 %v304_v44, -100.0 }
  0x87   : > { %569 = vlog2.f32 %v273_v31 }
  0x88   : > { %571 = vlog2.f32 %v284_v32 }
  0x89   : > { %573 = vlog2.f32 %v296_v33 }
  0x8a   : > { %575 = vlog2.f32 %v308_v34 }
  0x91   : > { %v570_v43 = vpop.eup %569 }
  0x92   : > { %v572_v45 = vpop.eup %571  ;;  %v275_v47 = vmul.f32 0.6931472, %v570_v43 }
  0x93   : > { %v574_v49 = vpop.eup %573  ;;  %v286_v51 = vmul.f32 0.6931472, %v572_v45 }
  0x94   : > { %v576_v53 = vpop.eup %575  ;;  %v276_v54 = vmax.f32 %v275_v47, -100.0  ;;  %v298_v56 = vmul.f32 0.6931472, %v574_v49 }
  0x95   : > { %v287_v57 = vmax.f32 %v286_v51, -100.0  ;;  %v310_v59 = vmul.f32 0.6931472, %v576_v53 }
  0x96   : > { %v278_v60 = vsel %vm277_vm0, %v270_v46, %v276_v54  ;;  %v299_v61 = vmax.f32 %v298_v56, -100.0 }
  0x97   : > { %v279_v62 = vsub.f32 0.0, %v278_v60  ;;  %v289_v63 = vsel %vm288_vm1, %v281_v50, %v287_v57  ;;  %v311_v0 = vmax.f32 %v310_v59, -100.0 }
  0x98   : > { %v290_v1 = vsub.f32 0.0, %v289_v63  ;;  %v301_v2 = vsel %vm300_vm2, %v293_v55, %v299_v61 }
  0x99   : > { %v302_v3 = vsub.f32 0.0, %v301_v2  ;;  %v313_v4 = vsel %vm312_vm3, %v305_v58, %v311_v0 }
  0x9a   : > { %v291_v6 = vadd.f32 %v290_v1, %v279_v62  ;;  %v314_v7 = vsub.f32 0.0, %v313_v4 }
  0x9c   : > { %v303_v8 = vadd.f32 %v302_v3, %v291_v6 }
  0x9e   : > { %v315_v9 = vadd.f32 %v314_v7, %v303_v8 }
  0xa0   : > { %v331_v10 = vsel %vm330_vm4, %v315_v9, 0.0 }
  0xa1   : > { %333 = vst [vmem:[%s231_s26] sm:$0xff] %v331_v10 }
  0xa2   : > { %650 = shalt.err (!%p647_p9)
}
  0xa3   : > { %s651_s16 = scalar_lea.hbm %s918_s29, 128  ;;  %s655_s4 = scalar_lea.hbm %s969_s2, 256 }
  0xa4   : > { %p652_p1 = scmp.ne.s32.totalorder %s918_s29, %s651_s16  ;;  %p656_p5 = scmp.lt.u32.totalorder %s918_s29, %s969_s2 }
  0xa5   : > { %p657_p13 = scmp.lt.u32.totalorder %s655_s4, %s651_s16  ;;  %p659_p8 = scmp.lt.u32.totalorder %s651_s16, %s918_s29 }
  0xa6   : > { %p653_p6 = pnand %p652_p1, %p981_p0 }
  0xa7   : > { %p658_p3 = por %p657_p13, %p656_p5 }
  0xa8   : > { %p654_p2 = pneg %p653_p6 }
  0xa9   : > { %p660_p11 = por %p659_p8, %p658_p3 }
  0xab   : > { %p661_p4 = pnand %p660_p11, %p654_p2 }
  0xad   : > { %664 = shalt.err (!%p661_p4)
}
  0xae   : > { %491 = dma.vmem_to_hbm [thread:$0]  (%p981_p0), %s920_s30, 128, %s918_s29, %s342_s3  }
  0xaf PF: > { %s368_s15 = sand.u32 1, %s703_s9   ;;  %p982_p7 = scmp.ne.s32.totalorder %s975_s24, 0 }
  0xb0   : > { %p983_p10 = scmp.ge.s32.totalorder %s723_s14, 2  ;;  %s369_s19 = scalar_lea.sflag [#allocation4], %s368_s15 }
  0xb2   : > { %p501_p12 = pnand %p983_p10, %p982_p7 }
  0xb4   : > { %698 = dma.done.wait (!%p501_p12), %s369_s19, 128  }
  0xb5   : > { %700 = vsyncadd (!%p501_p12), %s369_s19, 4294967168  ;;  %s21_s14 = sadd.s32 1, %s723_s14   ;;  %s984_s9 = smov %s707_s10 }
  0xb6   : > { %p18_p9 = scmp.ge.s32.totalorder %s21_s14, 4   ;;  %s985_s10 = smov %s711_s11 }
  0xb7   : > { %s986_s11 = smov %s801_s23  ;;  %s987_s12 = smov %s719_s13 }
  0xb8   : > { %s988_s13 = smov %s990_s17  ;;  %20 = sbr.rel (!%p18_p9) target bundleno = 8 (0x8), region = 101 }
  0xbf   :  { %374 = vsyncpa [#allocation3], 1 }
  0xc0   :  { %376 = vsyncpa [#allocation3 + $0x1], 1 }
  0xc1   :  { %377 = vsyncpa [#allocation6], 1 }
  0xc2   :  { %379 = vsyncpa [#allocation6 + $0x1], 1 }
  0xc3   :  { %380 = vsyncpa [#allocation4], 1 }
  0xc4   :  { %382 = vsyncpa [#allocation4 + $0x1], 1 }

</bundles_post_ra>
